<compile_context>
chip_gen: v5e
topology: v5e:2x2
jax: 0.10.0
libtpu: 0.0.40
codegen_flags: <defaults>
</compile_context>

<pallas_src>
import jax
import jax.numpy as jnp
from jax.experimental import pallas as pl
from jax.experimental.pallas import tpu as pltpu

VOCAB = 39
HIDDEN = 128
MIDDLE = 64
NUM_CLASSES = 2
OUT_PAD = 8                    # compact, contiguous log-softmax payload width
FUSED = HIDDEN + 128           # 256: lanes 0:128 hidden | 128:136 logits | rest 0
NEG = -1e30                    # bias fill for padded logit lanes (exp -> exact 0)


def _seq_kernel(x_ref, h0_ref, w_x_ref, w_h_ref, b_ref,
                out_ref, h_out_ref, h_scratch):
    t = pl.program_id(1)
    t_last = pl.num_programs(1) - 1

    @pl.when(t == 0)
    def _():
        # fresh batch tile -> load its initial hidden state
        h_scratch[...] = h0_ref[...]

    x = x_ref[0]                                   # (TB, VOCAB)  bf16
    h = h_scratch[...]                             # (TB, HIDDEN) f32

    # Single fused matmul (i2h | fc(i2o) folded), f32 accumulation on the MXU.
    y = (jnp.dot(x, w_x_ref[...], preferred_element_type=jnp.float32)
         + jnp.dot(h.astype(jnp.bfloat16), w_h_ref[...],
                   preferred_element_type=jnp.float32)
         + b_ref[...])                             # (TB, 256) f32

    new_h = y[:, :HIDDEN]                          # (TB, 128)
    h_scratch[...] = new_h                         # carry the recurrence

    @pl.when(t == t_last)
    def _():
        h_out_ref[...] = new_h                     # single store per tile

    # logits live in lanes 128:136; lanes >= 2 carry bias -1e30 (exp -> 0)
    logits = y[:, HIDDEN:HIDDEN + OUT_PAD]         # (TB, 8)
    m = jnp.max(logits, axis=1, keepdims=True)
    shifted = logits - m
    lse = jnp.log(jnp.sum(jnp.exp(shifted), axis=1, keepdims=True))
    out_ref[0, :, :] = shifted - lse               # compact (TB, 8) f32 store


def _pick_batch_tile(bp):
    """bp is a multiple of 8.  Prefer >=2 tiles for large batches (keeps both
    v7x TensorCores busy via the 'parallel' axis); otherwise take the largest
    tile to amortize per-grid-step overhead."""
    cands = (1024, 512, 256, 128, 64, 32, 16, 8)
    if bp >= 256:
        for tb in cands:
            if bp % tb == 0 and bp // tb >= 2:
                return tb
    for tb in cands:
        if bp % tb == 0:
            return tb
    return bp


def lstm_name_sequence(xs, hidden0, kp):
    """xs: (T, B, VOCAB), hidden0: (B, HIDDEN) f32.
    Returns (log_softmax outputs (T, B, NUM_CLASSES), final hidden (B, HIDDEN))."""
    T, B, _ = xs.shape

    # pad batch to a multiple of 8 (sublane alignment); padded rows are zeros
    bp = max(8, -(-B // 8) * 8)
    if bp != B:
        xs = jnp.pad(xs, ((0, 0), (0, bp - B), (0, 0)))
        hidden0 = jnp.pad(hidden0, ((0, bp - B), (0, 0)))

    TB = _pick_batch_tile(bp)
    n_b = bp // TB

    xs = xs.astype(jnp.bfloat16)
    hidden0 = hidden0.astype(jnp.float32)

    flops = 2 * T * bp * (VOCAB + HIDDEN) * FUSED
    transcendentals = T * bp * (OUT_PAD + 1)
    bytes_accessed = int(
        xs.size * 2 + hidden0.size * 4
        + kp["w_x"].size * 2 + kp["w_h"].size * 2 + kp["b"].size * 4
        + T * bp * OUT_PAD * 4 + bp * HIDDEN * 4)

    out_pad, h_final = pl.pallas_call(
        _seq_kernel,
        out_shape=(
            jax.ShapeDtypeStruct((T, bp, OUT_PAD), jnp.float32),
            jax.ShapeDtypeStruct((bp, HIDDEN), jnp.float32),
        ),
        grid_spec=pltpu.PrefetchScalarGridSpec(
            num_scalar_prefetch=0,
            grid=(n_b, T),
            in_specs=[
                pl.BlockSpec((1, TB, VOCAB), lambda b, t: (t, b, 0)),   # x[t]
                pl.BlockSpec((TB, HIDDEN), lambda b, t: (b, 0)),        # h0 (per tile)
                pl.BlockSpec((VOCAB, FUSED), lambda b, t: (0, 0)),      # weights:
                pl.BlockSpec((HIDDEN, FUSED), lambda b, t: (0, 0)),     #   constant maps
                pl.BlockSpec((1, FUSED), lambda b, t: (0, 0)),          #   => VMEM-resident
            ],
            out_specs=(
                pl.BlockSpec((1, TB, OUT_PAD), lambda b, t: (t, b, 0)),
                pl.BlockSpec((TB, HIDDEN), lambda b, t: (b, 0)),
            ),
            scratch_shapes=[pltpu.VMEM((TB, HIDDEN), jnp.float32)],
        ),
        compiler_params=pltpu.CompilerParams(
            dimension_semantics=("parallel", "arbitrary")),
        cost_estimate=pl.CostEstimate(
            flops=flops, transcendentals=transcendentals,
            bytes_accessed=bytes_accessed),
    )(xs, hidden0, kp["w_x"], kp["w_h"], kp["b"])

    return out_pad[:, :B, :NUM_CLASSES], h_final[:B]


def lstm_name_forward(x, hidden, kp):
    """Single-step path == PyTorch module forward(input, hidden)."""
    out, h = lstm_name_sequence(x[None], hidden, kp)
    return out[0], h


def init_params(key):
    """PyTorch nn.Linear-style uniform(+-1/sqrt(fan_in)), stored as (in, out)."""
    ks = jax.random.split(key, 6)

    def linear(kw, kb, fan_in, fan_out):
        bound = 1.0 / jnp.sqrt(jnp.float32(fan_in))
        w = jax.random.uniform(kw, (fan_in, fan_out), jnp.float32, -bound, bound)
        b = jax.random.uniform(kb, (1, fan_out), jnp.float32, -bound, bound)
        return w, b

    w_i2h, b_i2h = linear(ks[0], ks[1], VOCAB + HIDDEN, HIDDEN)
    w_i2o, b_i2o = linear(ks[2], ks[3], VOCAB + HIDDEN, MIDDLE)
    w_fc, b_fc = linear(ks[4], ks[5], MIDDLE, NUM_CLASSES)
    return dict(w_i2h=w_i2h, b_i2h=b_i2h, w_i2o=w_i2o, b_i2o=b_i2o,
                w_fc=w_fc, b_fc=b_fc)


def pack_params(p):
    """Fold fc into i2o (exact: no nonlinearity between them), fuse with i2h,
    split x/h parts, bf16 weights, pad logit lanes 2:8 with -1e30 bias."""
    w_log = p["w_i2o"] @ p["w_fc"]                       # (167, 2) f32
    b_log = p["b_i2o"] @ p["w_fc"] + p["b_fc"]           # (1, 2)   f32

    w = jnp.zeros((VOCAB + HIDDEN, FUSED), jnp.float32)
    w = w.at[:, :HIDDEN].set(p["w_i2h"])
    w = w.at[:, HIDDEN:HIDDEN + NUM_CLASSES].set(w_log)

    b = jnp.zeros((1, FUSED), jnp.float32)
    b = b.at[:, :HIDDEN].set(p["b_i2h"])
    b = b.at[:, HIDDEN:HIDDEN + NUM_CLASSES].set(b_log)
    b = b.at[:, HIDDEN + NUM_CLASSES:HIDDEN + OUT_PAD].set(NEG)

    return dict(w_x=w[:VOCAB].astype(jnp.bfloat16),       # (39, 256)
                w_h=w[VOCAB:].astype(jnp.bfloat16),        # (128, 256)
                b=b)                                       # (1, 256) f32


# -------- pure-JAX reference: UNFUSED fc (validates the folding), same
# -------- bf16-weight / f32-accumulate precision as the kernel. ------------
def _reference_step(x, h, p):
    comb = jnp.concatenate([x, h], axis=1).astype(jnp.bfloat16)
    new_h = (jnp.dot(comb, p["w_i2h"].astype(jnp.bfloat16),
                     preferred_element_type=jnp.float32) + p["b_i2h"])
    mid = (jnp.dot(comb, p["w_i2o"].astype(jnp.bfloat16),
                   preferred_element_type=jnp.float32) + p["b_i2o"])
    logits = mid @ p["w_fc"] + p["b_fc"]
    return jax.nn.log_softmax(logits, axis=1), new_h


def _reference_seq(xs, h0, p):
    def step(h, x):
        out, new_h = _reference_step(x, h, p)
        return new_h, out
    h_final, outs = jax.lax.scan(step, h0, xs)
    return outs, h_final


if __name__ == "__main__":
    key = jax.random.PRNGKey(0)
    k_p, k_x = jax.random.split(key)

    params = init_params(k_p)
    kp = pack_params(params)

    B, T = 2, 8
    idx = jax.random.randint(k_x, (T, B), 0, VOCAB)
    xs = jax.nn.one_hot(idx, VOCAB, dtype=jnp.float32)       # (T, B, 39)
    h0 = jnp.zeros((B, HIDDEN), jnp.float32)

    # fused-sequence path (recurrence inside one pallas_call)
    outs, h_final = lstm_name_sequence(xs, h0, kp)
    outs, h_final = jax.block_until_ready((outs, h_final))

    ref_outs, ref_h = _reference_seq(xs, h0, params)
    assert outs.shape == (T, B, NUM_CLASSES) and h_final.shape == (B, HIDDEN)
    assert jnp.allclose(outs, ref_outs, atol=2e-2, rtol=2e-2)
    assert jnp.allclose(h_final, ref_h, atol=2e-2, rtol=2e-2)

    # single-step path == the PyTorch module's forward(input, hidden)
    out1, h1 = lstm_name_forward(xs[0], h0, kp)
    out1, h1 = jax.block_until_ready((out1, h1))
    ref_out1, ref_h1 = _reference_step(xs[0], h0, params)
    assert jnp.allclose(out1, ref_out1, atol=2e-2, rtol=2e-2)
    assert jnp.allclose(h1, ref_h1, atol=2e-2, rtol=2e-2)

    print("KERNEL_OK")
</pallas_src>

<mosaic_0001>
module attributes {stable_mosaic.version = 11 : i64} {
  func.func @_seq_kernel(%arg0: i32, %arg1: i32, %arg2: memref<1x8x39xbf16, #tpu.memory_space<vmem>>, %arg3: memref<8x128xf32, #tpu.memory_space<vmem>>, %arg4: memref<39x256xbf16, #tpu.memory_space<vmem>>, %arg5: memref<128x256xbf16, #tpu.memory_space<vmem>>, %arg6: memref<1x256xf32, #tpu.memory_space<vmem>>, %arg7: memref<1x8x8xf32, #tpu.memory_space<vmem>>, %arg8: memref<8x128xf32, #tpu.memory_space<vmem>>, %arg9: memref<8x128xf32, #tpu.memory_space<vmem>>) attributes {dimension_semantics = [#tpu.dimension_semantics<parallel>, #tpu.dimension_semantics<arbitrary>], iteration_bounds = array<i64: 1, 8>, scalar_prefetch = 0 : i64, scratch_operands = 1 : i64, tpu.core_type = #tpu.core_type<tc>, window_params = [{transform_indices = @transform_0, window_bounds = array<i64: 1, 8, 39>}, {transform_indices = @transform_1, window_bounds = array<i64: 8, 128>}, {pipeline_mode = #tpu.pipeline_mode<synchronous>, transform_indices = @transform_2, window_bounds = array<i64: 39, 256>}, {pipeline_mode = #tpu.pipeline_mode<synchronous>, transform_indices = @transform_3, window_bounds = array<i64: 128, 256>}, {pipeline_mode = #tpu.pipeline_mode<synchronous>, transform_indices = @transform_4, window_bounds = array<i64: 1, 256>}, {transform_indices = @transform_5, window_bounds = array<i64: 1, 8, 8>}, {transform_indices = @transform_6, window_bounds = array<i64: 8, 128>}]} {
    %c0_i32 = arith.constant 0 : i32
    %0 = arith.cmpi eq, %arg1, %c0_i32 : i32
    %1 = arith.extui %0 : i1 to i32
    %c0_i32_0 = arith.constant 0 : i32
    %2 = arith.cmpi ne, %1, %c0_i32_0 : i32
    scf.if %2 {
      %c0_20 = arith.constant 0 : index
      %c0_21 = arith.constant 0 : index
      %34 = vector.load %arg3[%c0_20, %c0_21] : memref<8x128xf32, #tpu.memory_space<vmem>>, vector<8x128xf32>
      %c0_22 = arith.constant 0 : index
      %c0_23 = arith.constant 0 : index
      %35 = vector.load %arg9[%c0_22, %c0_23] : memref<8x128xf32, #tpu.memory_space<vmem>>, vector<8x128xf32>
      tpu.vector_store %arg9[%c0_22, %c0_23], %34 {strides = array<i32>} : memref<8x128xf32, #tpu.memory_space<vmem>>, vector<8x128xf32>,
    } else {
    }
    %c0 = arith.constant 0 : index
    %c0_1 = arith.constant 0 : index
    %c0_2 = arith.constant 0 : index
    %3 = vector.load %arg2[%c0, %c0_1, %c0_2] : memref<1x8x39xbf16, #tpu.memory_space<vmem>>, vector<1x8x39xbf16>
    %4 = vector.shape_cast %3 : vector<1x8x39xbf16> to vector<8x39xbf16>
    %c0_3 = arith.constant 0 : index
    %c0_4 = arith.constant 0 : index
    %5 = vector.load %arg9[%c0_3, %c0_4] : memref<8x128xf32, #tpu.memory_space<vmem>>, vector<8x128xf32>
    %c0_5 = arith.constant 0 : index
    %c0_6 = arith.constant 0 : index
    %6 = vector.load %arg4[%c0_5, %c0_6] : memref<39x256xbf16, #tpu.memory_space<vmem>>, vector<39x256xbf16>
    %cst = arith.constant dense<0.000000e+00> : vector<8x256xf32>
    %7 = tpu.matmul %4, %6, %cst {dimension_numbers = #tpu.dot_dimension_numbers<[1], [0], [0], [1], [0, 0, 1, 1], [], []>} : vector<8x39xbf16>, vector<39x256xbf16>, vector<8x256xf32> -> vector<8x256xf32>
    %8 = arith.truncf %5 : vector<8x128xf32> to vector<8x128xbf16>
    %c0_7 = arith.constant 0 : index
    %c0_8 = arith.constant 0 : index
    %9 = vector.load %arg5[%c0_7, %c0_8] : memref<128x256xbf16, #tpu.memory_space<vmem>>, vector<128x256xbf16>
    %cst_9 = arith.constant dense<0.000000e+00> : vector<8x256xf32>
    %10 = tpu.matmul %8, %9, %cst_9 {dimension_numbers = #tpu.dot_dimension_numbers<[1], [0], [0], [1], [0, 0, 1, 1], [], []>} : vector<8x128xbf16>, vector<128x256xbf16>, vector<8x256xf32> -> vector<8x256xf32>
    %11 = arith.addf %7, %10 : vector<8x256xf32>
    %c0_10 = arith.constant 0 : index
    %c0_11 = arith.constant 0 : index
    %12 = vector.load %arg6[%c0_10, %c0_11] : memref<1x256xf32, #tpu.memory_space<vmem>>, vector<1x256xf32>
    %13 = vector.broadcast %12 : vector<1x256xf32> to vector<8x256xf32>
    %14 = arith.addf %11, %13 : vector<8x256xf32>
    %15 = vector.extract_strided_slice %14 {offsets = [0, 0], sizes = [8, 128], strides = [1, 1]} : vector<8x256xf32> to vector<8x128xf32>
    %c0_12 = arith.constant 0 : index
    %c0_13 = arith.constant 0 : index
    %16 = vector.load %arg9[%c0_12, %c0_13] : memref<8x128xf32, #tpu.memory_space<vmem>>, vector<8x128xf32>
    tpu.vector_store %arg9[%c0_12, %c0_13], %15 {strides = array<i32>} : memref<8x128xf32, #tpu.memory_space<vmem>>, vector<8x128xf32>,
    %c7_i32 = arith.constant 7 : i32
    %17 = arith.cmpi eq, %arg1, %c7_i32 : i32
    %18 = arith.extui %17 : i1 to i32
    %c0_i32_14 = arith.constant 0 : i32
    %19 = arith.cmpi ne, %18, %c0_i32_14 : i32
    scf.if %19 {
      %c0_20 = arith.constant 0 : index
      %c0_21 = arith.constant 0 : index
      %34 = vector.load %arg8[%c0_20, %c0_21] : memref<8x128xf32, #tpu.memory_space<vmem>>, vector<8x128xf32>
      tpu.vector_store %arg8[%c0_20, %c0_21], %15 {strides = array<i32>} : memref<8x128xf32, #tpu.memory_space<vmem>>, vector<8x128xf32>,
    } else {
    }
    %20 = vector.extract_strided_slice %14 {offsets = [0, 128], sizes = [8, 8], strides = [1, 1]} : vector<8x256xf32> to vector<8x8xf32>
    %cst_15 = arith.constant dense<0xFF800000> : vector<8xf32>
    %21 = vector.multi_reduction <maximumf>, %20, %cst_15 [1] : vector<8x8xf32> to vector<8xf32>
    %22 = vector.shape_cast %21 : vector<8xf32> to vector<8x1xf32>
    %23 = vector.broadcast %22 : vector<8x1xf32> to vector<8x8xf32>
    %24 = arith.subf %20, %23 : vector<8x8xf32>
    %25 = math.exp %24 : vector<8x8xf32>
    %cst_16 = arith.constant dense<0.000000e+00> : vector<8xf32>
    %26 = vector.multi_reduction <add>, %25, %cst_16 [1] : vector<8x8xf32> to vector<8xf32>
    %27 = vector.shape_cast %26 : vector<8xf32> to vector<8x1xf32>
    %28 = math.log %27 : vector<8x1xf32>
    %29 = vector.broadcast %28 : vector<8x1xf32> to vector<8x8xf32>
    %30 = arith.subf %24, %29 : vector<8x8xf32>
    %c0_17 = arith.constant 0 : index
    %c0_18 = arith.constant 0 : index
    %c0_19 = arith.constant 0 : index
    %31 = vector.load %arg7[%c0_17, %c0_18, %c0_19] : memref<1x8x8xf32, #tpu.memory_space<vmem>>, vector<1x8x8xf32>
    %32 = vector.shape_cast %31 : vector<1x8x8xf32> to vector<8x8xf32>
    %33 = vector.shape_cast %30 : vector<8x8xf32> to vector<1x8x8xf32>
    tpu.vector_store %arg7[%c0_17, %c0_18, %c0_19], %33 {strides = array<i32>} : memref<1x8x8xf32, #tpu.memory_space<vmem>>, vector<1x8x8xf32>,
    return
  }
  func.func @transform_0(%arg0: i32, %arg1: i32) -> (i32, i32, i32) {
    %c0_i32 = arith.constant 0 : i32
    %c0_i32_0 = arith.constant 0 : i32
    return %arg1, %arg0, %c0_i32 : i32, i32, i32
  }
  func.func @transform_1(%arg0: i32, %arg1: i32) -> (i32, i32) {
    %c0_i32 = arith.constant 0 : i32
    %c0_i32_0 = arith.constant 0 : i32
    return %arg0, %c0_i32 : i32, i32
  }
  func.func @transform_2(%arg0: i32, %arg1: i32) -> (i32, i32) {
    %c0_i32 = arith.constant 0 : i32
    %c0_i32_0 = arith.constant 0 : i32
    %c0_i32_1 = arith.constant 0 : i32
    return %c0_i32, %c0_i32_0 : i32, i32
  }
  func.func @transform_3(%arg0: i32, %arg1: i32) -> (i32, i32) {
    %c0_i32 = arith.constant 0 : i32
    %c0_i32_0 = arith.constant 0 : i32
    %c0_i32_1 = arith.constant 0 : i32
    return %c0_i32, %c0_i32_0 : i32, i32
  }
  func.func @transform_4(%arg0: i32, %arg1: i32) -> (i32, i32) {
    %c0_i32 = arith.constant 0 : i32
    %c0_i32_0 = arith.constant 0 : i32
    %c0_i32_1 = arith.constant 0 : i32
    return %c0_i32, %c0_i32_0 : i32, i32
  }
  func.func @transform_5(%arg0: i32, %arg1: i32) -> (i32, i32, i32) {
    %c0_i32 = arith.constant 0 : i32
    %c0_i32_0 = arith.constant 0 : i32
    return %arg1, %arg0, %c0_i32 : i32, i32, i32
  }
  func.func @transform_6(%arg0: i32, %arg1: i32) -> (i32, i32) {
    %c0_i32 = arith.constant 0 : i32
    %c0_i32_0 = arith.constant 0 : i32
    return %arg0, %c0_i32 : i32, i32
  }
}

</mosaic_0001>

<bundles_post_ra>
// kernel: tpu_custom_call.1
= control target key start
LH: loop header
LB: loop body
LE: loop exit
PB: predicated region body
PF: predicated region fallthrough
CT: control target
= control target key end

     0   :  { %s1443_s0 = inlined_call_operand.hbm [shape: bf16[8,8,39], index: 0, kind: input, shape index: {}]   ;;  %s1444_s1 = inlined_call_operand.hbm [shape: f32[8,128], index: 1, kind: input, shape index: {}]   ;;  %s1445_s2 = inlined_call_operand.hbm [shape: bf16[39,256], index: 2, kind: input, shape index: {}]   ;;  %s1446_s3 = inlined_call_operand.hbm [shape: bf16[128,256], index: 3, kind: input, shape index: {}]   ;;  %s1447_s4 = inlined_call_operand.vmem [shape: f32[1,256], index: 4, kind: input, shape index: {}]   ;;  %s1448_s5 = inlined_call_operand.hbm [shape: f32[8,8,8], index: 5, kind: output, shape index: {0}]   ;;  %s1449_s6 = inlined_call_operand.hbm [shape: f32[8,128], index: 6, kind: output, shape index: {1}]  }
   0x1   :  { %1450 = sst [smem:[#allocation19_spill]] %s1444_s1 }
   0x2   :  { %1451 = sst [smem:[#allocation20_spill]] %s1445_s2 }
   0x3   :  { %1452 = sst [smem:[#allocation21_spill]] %s1446_s3 }
   0x4   :  { %12 = vsyncpa [#allocation4], 0 }
   0x5   :  { %14 = vsyncpa [#allocation4 + $0x1], 0 }
   0x6   :  { %15 = vsyncpa [#allocation7], 0 }
   0x7   :  { %16 = vsyncpa [#allocation10], 0 }
   0x8   :  { %17 = vsyncpa [#allocation5], 0 }
   0x9   :  { %19 = vsyncpa [#allocation5 + $0x1], 0 }
   0xa   :  { %20 = vsyncpa [#allocation13], 0  ;;  %s1249_s21 = smov 0   ;;  %s1251_s22 = smov 0  }
   0xb   :  { %s1253_s23 = smov 0   ;;  %s1255_s24 = smov 0  }
   0xc   :  { %s1257_s25 = smov 0   ;;  %s1259_s26 = smov 0  }
   0xd LB: > { %s731_s27 = sadd.s32 4294967295, %s1205_s26   ;;  %s732_s28 = sadd.s32 4294967294, %s1205_s26   ;;  %s1205_s26 = sphi %s1259_s26, %s26_s26   ;;  %s1201_s25 = sphi %s1257_s25, %s1468_s25   ;;  %s1197_s24 = sphi %s1255_s24, %s1467_s24   ;;  %s1193_s23 = sphi %s1253_s23, %s1466_s23   ;;  %s1189_s22 = sphi %s1251_s22, %s1465_s22   ;;  %s1185_s21 = sphi %s1249_s21, %s1464_s21  }
   0xe   : > { %p60_p0 = scmp.ne.s32.totalorder %s1189_s22, %s1185_s21  ;;  %p1283_p1 = scmp.eq.s32.totalorder %s731_s27, 0 }
   0xf   : > { %p1287_p2 = scmp.eq.s32.totalorder %s731_s27, 7  ;;  %p181_p3 = scmp.eq.s32.totalorder %s732_s28, 7 }
  0x10   : > { %p1293_p4 = por %p1283_p1, %p60_p0  ;;  %p733_p5 = scmp.ge.s32.totalorder %s1205_s26, 1 }
  0x11   : > { %p1298_p6 = por %p181_p3, %p60_p0  ;;  %p214_p7 = scmp.lt.s32.totalorder %s1205_s26, 9 }
  0x12   : > { %s1457_s1 = sld [smem:[#allocation19_spill]]  ;;  %s1207_s13 = smov [#allocation6]  }
  0x13   : > { %p1306_p8 = pnand %p733_p5, %p214_p7  ;;  %s230_s14 = sshll.u32 %s1207_s13, 4  ;;  %s231_s14 = int_to_ptr.vmem [resolvable:$true] %s230_s14 }
  0x14   : > { %s1459_s2 = sld [smem:[#allocation20_spill]]  ;;  %s1208_s19 = smov [#allocation8]  }
  0x15   : > { %p876_p9 = pneg %p1306_p8  ;;  %s241_s20 = sshll.u32 %s1208_s19, 4  ;;  %s242_s20 = int_to_ptr.vmem [resolvable:$true] %s241_s20 }
  0x16   : > { %s1209_s27 = smov 128   ;;  %s1210_s28 = smov 8  }
  0x17   : > { %p1317_p10 = pnand %p876_p9, %p1283_p1  ;;  %s1461_s3 = sld [smem:[#allocation21_spill]] }
  0x18   : > { %s228_s11 = sshll.u32 %s1457_s1, 4  ;;  %s1211_s15 = smov [#allocation9]   ;;  %s229_s11 = int_to_ptr.hbm [resolvable:$true] %s228_s11 }
  0x19   : > { %879 = dma.hbm_to_vmem [thread:$0]  (!%p1317_p10), %s229_s11, 128, %s231_s14, [#allocation7]  }
  0x1a   : > { %s239_s17 = sshll.u32 %s1459_s2, 4  ;;  %s255_s16 = sshll.u32 %s1211_s15, 4  ;;  %s240_s17 = int_to_ptr.hbm [resolvable:$true] %s239_s17  ;;  %s256_s16 = int_to_ptr.vmem [resolvable:$true] %s255_s16 }
  0x1b   : > { %882 = dma.hbm_to_vmem [thread:$0]  (!%p1317_p10), %s240_s17, 640, %s242_s20, [#allocation7], %s1209_s27, %s1209_s27, %s1210_s28  }
  0x1c   : > { %s47_s11 = sadd.s32 1, %s1193_s23  ;;  %s35_s14 = sadd.s32 1, %s1201_s25 }
  0x1d   : > { %s253_s13 = sshll.u32 %s1461_s3, 4  ;;  %p54_p11 = scmp.ne.s32.totalorder %s1193_s23, %s1189_s22  ;;  %s254_s13 = int_to_ptr.hbm [resolvable:$true] %s253_s13 }
  0x1e   : > { %885 = dma.hbm_to_vmem [thread:$0]  (!%p1317_p10), %s254_s13, 2048, %s256_s16, [#allocation10], %s1209_s27, %s1209_s27, %s1210_s28  }
  0x1f   : > { %p36_p12 = scmp.ge.s32.totalorder %s35_s14, 8  ;;  %p55_p13 = scmp.eq.s32.totalorder %s1205_s26, 0 }
  0x20   : > { %p1337_p0 = por %p1287_p2, %p54_p11  ;;  %p897_p3 = scmp.lt.s32.totalorder %s1205_s26, 8 }
  0x21   : > { %s1470_s14 = smov (%p36_p12, %s35_s14), 0  ;;  %p1344_p5 = por %p55_p13, %p54_p11 }
  0x22   : > { %s272_s18 = sand.u32 1, %s1193_s23   ;;  %s42_s20 = ssub.s32 %s1201_s25, %s1470_s14 }
  0x23   : > { %p45_p7 = scmp.eq.s32.totalorder %s42_s20, 0  ;;  %s738_s27 = sshll.u32 %s272_s18, 2 }
  0x24   : > { %s739_s28 = sshll.u32 %s1201_s25, 2  ;;  %s276_s16 = scalar_lea.vmem [#allocation3], %s738_s27 }
  0x25   : > { %s1353_s9 = scalar_select %p45_p7, %s1193_s23, %s47_s11  }
  0x26   : > { %s281_s15 = scalar_lea.hbm %s1443_s0, %s739_s28  ;;  %s285_s1 = sshll.u32 %s276_s16, 4  ;;  %s286_s1 = int_to_ptr.vmem [resolvable:$true] %s285_s1 }
  0x27   : > { %s283_s2 = sshll.u32 %s281_s15, 4  ;;  %p887_p9 = pnand %p897_p3, %p1344_p5  ;;  %s284_s2 = int_to_ptr.hbm [resolvable:$true] %s283_s2 }
  0x28   : > { %s273_s3 = scalar_lea.sflag [#allocation4], %s272_s18  ;;  %294 = sbr.rel (%p1306_p8) target bundleno = 491 (0x1eb), region = 40 }
  0x29   : > { %889 = dma.hbm_to_vmem [thread:$0]  (!%p887_p9), %s284_s2, 64, %s286_s1, %s273_s3  }
  0x2a   : > { %s1365_s11 = sand.u32 (!%p1306_p8), 1, %s1189_s22  }
  0x2b   : > { %s741_s20 = sshll.u32 (!%p1306_p8), %s1365_s11, 2  ;;  %s297_s27 = scalar_lea.sflag (!%p1306_p8), [#allocation4], %s1365_s11 }
  0x2c   : > { %s1369_s28 = scalar_lea.vmem (!%p1306_p8), [#allocation3], %s741_s20 }
  0x2d   : > { %1164 = dma.done.wait (%p1293_p4), %s297_s27, 64  }
  0x2e   : > { %1166 = vsyncadd (%p1293_p4), %s297_s27, 4294967232 }
  0x2f   : > { %1168 = dma.done.wait (%p1283_p1), [#allocation7], 768  }
  0x30   : > { %1170 = vsyncadd (%p1283_p1), [#allocation7], 4294966528 }
  0x31   : > { %1172 = dma.done.wait (%p1283_p1), [#allocation10], 2048  }
  0x32   : > { %1174 = vsyncadd (%p1283_p1), [#allocation10], 4294965248  ;;  %s745_s1 = sshll.u32 %s1365_s11, 3  ;;  %p746_p8 = scmp.ne.s32.totalorder %s1197_s24, 0 }
  0x33   : > { %s1384_s2 = scalar_lea.vmem [#allocation11], %s745_s1 }
  0x34   : > { %349 = sbr.rel (%p746_p8) target bundleno = 59 (0x3b), region = 60 }
  0x39   : > { %v350_v0 = vld [vmem:[#allocation6] sm:$0xff] }
  0x3a   : > { %351 = vst [vmem:[#allocation2] sm:$0xff] %v350_v0 }
  0x3b PF: > { %v805_v1 = vld [vmem:[#allocation9 + $0x70] sm:$0xf]  ;;  %v855_v2 = vld [vmem:[#allocation9 + $0x74] sm:$0xf0]  ;;  %v854_v3 = vld [vmem:[#allocation9 + $0x74] sm:$0xf] }
  0x3c   : > { %v806_v4 = vor.u32 %v855_v2, %v805_v1  ;;  %v807_v5 = vld [vmem:[#allocation9 + $0x78] sm:$0xf0]  ;;  %v797_v6 = vld [vmem:[#allocation9 + $0x60] sm:$0xf]  ;;  %v853_v7 = vld [vmem:[#allocation9 + $0x64] sm:$0xf0] }
  0x3d   : > { %v810_v8 = vor.u32 %v854_v3, %v807_v5  ;;  %v852_v9 = vld [vmem:[#allocation9 + $0x64] sm:$0xf]  ;;  %v799_v10 = vld [vmem:[#allocation9 + $0x68] sm:$0xf0]  ;;  %v358_v11 = vld [vmem:[#allocation8 + $0x20] sm:$0xff]  ;;  %vm511_vm0 = vcmask 1042432   ;;  %v798_v12 = vor.u32 %v853_v7, %v797_v6 }
  0x3e   : > { %456 = vmatpush.bf16.msra.mxu0 %v806_v4  ;;  %v495_v13 = vunpack.c.l.b16 %v358_v11  ;;  %vm512_vm1 = vcmask 1043456   ;;  %v802_v14 = vor.u32 %v852_v9, %v799_v10  ;;  %v1212_v15 = vmov 65535   ;;  %v789_v18 = vld [vmem:[#allocation9 + $0x50] sm:$0xf]  ;;  %v851_v19 = vld [vmem:[#allocation9 + $0x54] sm:$0xf0] }
  0x3f   : > { %469 = vmatpush.bf16.msra.mxu1 %v810_v8  ;;  %v513_v16 = vsel %vm511_vm0, 4294967295, %v1212_v15  ;;  %v496_v17 = vunpack.c.h.b16 %v358_v11  ;;  %v850_v22 = vld [vmem:[#allocation9 + $0x54] sm:$0xf]  ;;  %v791_v23 = vld [vmem:[#allocation9 + $0x58] sm:$0xf0]  ;;  %v790_v28 = vor.u32 %v851_v19, %v789_v18  ;;  %vm507_vm2 = vcmask 318464  }
  0x40   : > { %v501_v20 = vpack.c.b16 %v495_v13, %v495_v13  ;;  %v514_v21 = vsel %vm512_vm1, %v513_v16, 0  ;;  %v821_v25 = vld [vmem:[#allocation8 + $0x10] sm:$0xf]  ;;  %v839_v26 = vld [vmem:[#allocation8 + $0x14] sm:$0xf0]  ;;  %v794_v32 = vor.u32 %v850_v22, %v791_v23  ;;  %p829_p1 = scmp.ne.s32.totalorder %s1197_s24, 7 }
  0x41   : > { %v502_v24 = vpack.c.b16 %v496_v17, %v496_v17  ;;  %v838_v29 = vld [vmem:[#allocation8 + $0x14] sm:$0xf]  ;;  %v823_v30 = vld [vmem:[#allocation8 + $0x18] sm:$0xf0]  ;;  %v781_v33 = vld [vmem:[#allocation9 + $0x40] sm:$0xf]  ;;  %v822_v35 = vor.u32 %v839_v26, %v821_v25 }
  0x42   : > { %457 = vmatpush.bf16.msra.mxu0 %v798_v12  ;;  %v516_v27 = vand.u32 %v514_v21, %v501_v20  ;;  %v849_v34 = vld [vmem:[#allocation9 + $0x44] sm:$0xf0]  ;;  %v848_v36 = vld [vmem:[#allocation9 + $0x44] sm:$0xf]  ;;  %v783_v37 = vld [vmem:[#allocation9 + $0x48] sm:$0xf0]  ;;  %v826_v38 = vor.u32 %v838_v29, %v823_v30 }
  0x43   : > { %470 = vmatpush.bf16.msra.mxu1 %v802_v14  ;;  %v519_v31 = vand.u32 %v514_v21, %v502_v24  ;;  %v813_v39 = vld [vmem:[#allocation8] sm:$0xf]  ;;  %v837_v40 = vld [vmem:[#allocation8 + $0x4] sm:$0xf0]  ;;  %v782_v41 = vor.u32 %v849_v34, %v781_v33  ;;  %v836_v42 = vld [vmem:[#allocation8 + $0x4] sm:$0xf]  ;;  %v786_v44 = vor.u32 %v848_v36, %v783_v37 }
  0x44   : > { %526 = vmatpush.bf16.msra.mxu2 %v516_v27  ;;  %v815_v43 = vld [vmem:[#allocation8 + $0x8] sm:$0xf0]  ;;  %v773_v45 = vld [vmem:[#allocation9 + $0x30] sm:$0xf]  ;;  %v847_v46 = vld [vmem:[#allocation9 + $0x34] sm:$0xf0]  ;;  %v814_v47 = vor.u32 %v837_v40, %v813_v39 }
  0x45   : > { %539 = vmatpush.bf16.msra.mxu3 %v519_v31  ;;  %v846_v48 = vld [vmem:[#allocation9 + $0x34] sm:$0xf]  ;;  %v775_v49 = vld [vmem:[#allocation9 + $0x38] sm:$0xf0]  ;;  %v818_v50 = vor.u32 %v836_v42, %v815_v43  ;;  %v774_v51 = vor.u32 %v847_v46, %v773_v45  ;;  %v765_v53 = vld [vmem:[#allocation9 + $0x20] sm:$0xf] }
  0x46   : > { %458 = vmatpush.bf16.msra.mxu0 %v790_v28  ;;  %v778_v52 = vor.u32 %v846_v48, %v775_v49  ;;  %v845_v54 = vld [vmem:[#allocation9 + $0x24] sm:$0xf0]  ;;  %v844_v56 = vld [vmem:[#allocation9 + $0x24] sm:$0xf]  ;;  %v767_v57 = vld [vmem:[#allocation9 + $0x28] sm:$0xf0] }
  0x47   : > { %471 = vmatpush.bf16.msra.mxu1 %v794_v32  ;;  %v352_v55 = vld [vmem:[%s1369_s28] sm:$0xf]  ;;  %v766_v58 = vor.u32 %v845_v54, %v765_v53  ;;  %v770_v59 = vor.u32 %v844_v56, %v767_v57  ;;  %v757_v60 = vld [vmem:[#allocation9 + $0x10] sm:$0xf]  ;;  %v843_v61 = vld [vmem:[#allocation9 + $0x14] sm:$0xf0] }
  0x48   : > { %527 = vmatpush.bf16.msra.mxu2 %v822_v35  ;;  %v842_v62 = vld [vmem:[#allocation9 + $0x14] sm:$0xf]  ;;  %v759_v63 = vld [vmem:[#allocation9 + $0x18] sm:$0xf0]  ;;  %v758_v0 = vor.u32 %v843_v61, %v757_v60  ;;  %v749_v2 = vld [vmem:[#allocation9] sm:$0xf] }
  0x49   : > { %540 = vmatpush.bf16.msra.mxu3 %v826_v38  ;;  %v762_v1 = vor.u32 %v842_v62, %v759_v63  ;;  %v841_v3 = vld [vmem:[#allocation9 + $0x4] sm:$0xf0]  ;;  %v840_v4 = vld [vmem:[#allocation9 + $0x4] sm:$0xf]  ;;  %v751_v5 = vld [vmem:[#allocation9 + $0x8] sm:$0xf0] }
  0x4a   : > { %459 = vmatpush.bf16.msra.mxu0 %v782_v41  ;;  %v750_v6 = vor.u32 %v841_v3, %v749_v2  ;;  %v353_v7 = vld [vmem:[#allocation2] sm:$0xff]  ;;  %v754_v8 = vor.u32 %v840_v4, %v751_v5 }
  0x4b   : > { %472 = vmatpush.bf16.msra.mxu1 %v786_v44  ;;  %v359_v9 = vpack.c.bf16 %v353_v7, %v353_v7  ;;  %v547_v12 = vld [vmem:[%s1447_s4] sm:$0x3] }
  0x4c   : > { %528 = vmatpush.bf16.msra.mxu2 %v814_v47  ;;  %v549_v13 = vperm.slane %v547_v12, 0  ;;  %v550_v15 = vperm.slane %v547_v12, 1 }
  0x4d   : > { %541 = vmatpush.bf16.msra.mxu3 %v818_v50 }
  0x4e   : > { %460 = vmatpush.bf16.msra.mxu0 %v774_v51 }
  0x4f   : > { %473 = vmatpush.bf16.msra.mxu1 %v778_v52  ;;  %827 = vmatmul.msk.bf16.vlgmr.msra.gmra.mxu2 %vm507_vm2, %v352_v55 }
  0x50   : > { %828 = vmatmul.msk.bf16.vlgmr.msra.gmra.mxu3 %vm507_vm2, %v352_v55 }
  0x52   : > { %461 = vmatpush.bf16.msra.mxu0 %v766_v58 }
  0x53   : > { %474 = vmatpush.bf16.msra.mxu1 %v770_v59 }
  0x56   : > { %462 = vmatpush.bf16.msra.mxu0 %v758_v0 }
  0x57   : > { %475 = vmatpush.bf16.msra.mxu1 %v762_v1 }
  0x5a   : > { %463 = vmatpush.bf16.msra.mxu0 %v750_v6 }
  0x5b   : > { %476 = vmatpush.bf16.msra.mxu1 %v754_v8 }
  0x5d   : > { %464 = vmatmul.bf16.vlgmr.msra.gmra.mxu0 %v359_v9 }
  0x5e   : > { %477 = vmatmul.bf16.vlgmr.msra.gmra.mxu1 %v359_v9 }
  0xd2   : > { %v530_v10 = vpop.f32.mrf.mxu2 }
  0xd3   : > { %v543_v11 = vpop.f32.mrf.mxu3 }
  0xda   : > { %v465_v14 = vpop.f32.mrf.mxu0  ;;  %v532_v16 = vpop.f32.mrf.mxu2 }
  0xdb   : > { %v531_v17 = vadd.f32 %v530_v10, %v465_v14  ;;  %v478_v18 = vpop.f32.mrf.mxu1  ;;  %v545_v19 = vpop.f32.mrf.mxu3 }
  0xdc   : > { %v544_v20 = vadd.f32 %v543_v11, %v478_v18 }
  0xdd   : > { %v553_v21 = vadd.f32 %v549_v13, %v531_v17 }
  0xde   : > { %v554_v22 = vadd.f32 %v550_v15, %v544_v20 }
  0xdf   : > { %555 = vst [vmem:[#allocation2] sm:$0xff] %v553_v21  ;;  %559 = sbr.rel (%p829_p1) target bundleno = 229 (0xe5), region = 64 }
  0xe2   : > { %v467_v23 = vpop.f32.mrf.mxu0 }
  0xe3   : > { %v480_v24 = vpop.f32.mrf.mxu1 }
  0xe4   : > { %560 = vst [vmem:[#allocation12] sm:$0xff] %v553_v21 }
  0xe5 PF: > { %vm561_vm3 = vcmask 64512   ;;  %s1213_s7 = smov [#allocation12]   ;;  %s605_s10 = sshll.u32 %s1449_s6, 4  ;;  %s606_s10 = int_to_ptr.hbm [resolvable:$true] %s605_s10 }
  0xe6   : > { %v562_v25 = vsel %vm561_vm3, %v554_v22, -inf  ;;  %s603_s12 = sshll.u32 %s1213_s7, 4  ;;  %s831_s13 = sshll.u32 %s1197_s24, 3  ;;  %s604_s12 = int_to_ptr.vmem [resolvable:$true] %s603_s12 }
  0xe7   : > { %563 = vmax.xlane.f32.xlu0 %v562_v25  ;;  %872 = dma.vmem_to_hbm [thread:$0]  (%p1287_p2), %s604_s12, 128, %s606_s10, [#allocation13]  }
  0xe8   : > { %s587_s20 = scalar_lea.hbm %s1448_s5, %s831_s13  ;;  %s589_s27 = sshll.u32 %s1384_s2, 4  ;;  %s590_s27 = int_to_ptr.vmem [resolvable:$true] %s589_s27 }
  0xe9   : > { %s591_s28 = sshll.u32 %s587_s20, 4  ;;  %s576_s1 = scalar_lea.sflag [#allocation5], %s1365_s11  ;;  %s592_s28 = int_to_ptr.hbm [resolvable:$true] %s591_s28 }
  0xea   : > { %s1125_s3 = sshra.s32 %s592_s28, 4  ;;  %s1131_s12 = scalar_lea.hbm %s1448_s5, 64  ;;  %s1126_s3 = int_to_ptr.hbm [resolvable:$true] %s1125_s3 }
  0xeb   : > { %s1127_s29 = scalar_lea.hbm %s1126_s3, 8  ;;  %p1132_p12 = scmp.lt.s32.totalorder %s1126_s3, %s1448_s5 }
  0xec   : > { %p1128_p4 = scmp.ne.s32.totalorder %s1126_s3, %s1127_s29  ;;  %p1133_p13 = scmp.lt.s32.totalorder %s1131_s12, %s1127_s29 }
  0xee   : > { %p1129_p10 = pnand %p1128_p4, %p1337_p0  ;;  %p1134_p3 = por %p1133_p13, %p1132_p12 }
  0xf0   : > { %p1130_p11 = pneg %p1129_p10 }
  0xf2   : > { %p1135_p5 = pnand %p1134_p3, %p1130_p11 }
 0x15a   : > { %v564_v26 = vpop.xlane.xlu0 %563 }
 0x15b   : > { %v565_v27 = vsub.f32 %v554_v22, %v564_v26 }
 0x15d   : > { %v566_v28 = vmul.f32 1.442695, %v565_v27 }
 0x15f   : > { %959 = vpow2.f32 %v566_v28 }
 0x165   : > { %v960_v29 = vpop.eup %959 }
 0x166   : > { %v568_v30 = vsel %vm561_vm3, %v960_v29, 0.0 }
 0x167   : > { %569 = vadd.xlane.f32.xlu0 %v568_v30 }
 0x1da   : > { %v570_v31 = vpop.xlane.xlu0 %569 }
 0x1db   : > { %961 = vlog2.f32 %v570_v31 }
 0x1e1   : > { %v962_v32 = vpop.eup %961 }
 0x1e2   : > { %v572_v33 = vmul.f32 0.6931472, %v962_v32 }
 0x1e4   : > { %v573_v34 = vsub.f32 %v565_v27, %v572_v33 }
 0x1e6   : > { %574 = vst.msk [vmem:[%s1384_s2] sm:$0xff] %vm561_vm3, %v573_v34 }
 0x1e7   : > { %1138 = shalt.err (!%p1135_p5)
}
 0x1e8   : > { %870 = dma.vmem_to_hbm [thread:$0]  (%p1337_p0), %s590_s27, 128, %s592_s28, %s576_s1  }
 0x1e9   : > { %1176 = dma.done.wait (%p1287_p2), [#allocation13], 128  }
 0x1ea   : > { %1178 = vsyncadd (%p1287_p2), [#allocation13], 4294967168 }
 0x1eb PF: > { %p903_p7 = scmp.ge.s32.totalorder %s1205_s26, 2  ;;  %s622_s11 = sand.u32 1, %s1185_s21  }
 0x1ec   : > { %s623_s2 = scalar_lea.sflag [#allocation5], %s622_s11 }
 0x1ed   : > { %p891_p9 = pnand %p903_p7, %p1298_p6 }
 0x1ef   : > { %p892_p8 = pneg %p891_p9 }
 0x1f1   : > { %1180 = dma.done.wait (%p892_p8), %s623_s2, 128  }
 0x1f2   : > { %1182 = vsyncadd (%p892_p8), %s623_s2, 4294967168  ;;  %s26_s26 = sadd.s32 1, %s1205_s26   ;;  %s1464_s21 = smov %s1189_s22 }
 0x1f3   : > { %p23_p0 = scmp.ge.s32.totalorder %s26_s26, 10   ;;  %s1465_s22 = smov %s1193_s23 }
 0x1f4   : > { %s1466_s23 = smov %s1353_s9  ;;  %s1467_s24 = smov %s1201_s25 }
 0x1f5   : > { %s1468_s25 = smov %s1470_s14  ;;  %25 = sbr.rel (!%p23_p0) target bundleno = 13 (0xd), region = 115 }
 0x1fa   :  { %629 = vsyncpa [#allocation4], 1 }
 0x1fb   :  { %631 = vsyncpa [#allocation4 + $0x1], 1 }
 0x1fc   :  { %632 = vsyncpa [#allocation7], 1 }
 0x1fd   :  { %633 = vsyncpa [#allocation10], 1 }
 0x1fe   :  { %634 = vsyncpa [#allocation5], 1 }
 0x1ff   :  { %636 = vsyncpa [#allocation5 + $0x1], 1 }
 0x200   :  { %637 = vsyncpa [#allocation13], 1 }

</bundles_post_ra>
